<compile_context>
chip_gen: v5e
topology: v5e:2x2
jax: 0.10.0
libtpu: 0.0.40
codegen_flags: <defaults>
</compile_context>

<pallas_src>
import functools
import math

import jax
import jax.numpy as jnp
from jax.experimental import pallas as pl
from jax.experimental.pallas import tpu as pltpu

# --- config (matches the PyTorch module) ---
LAYER_SIZES = [3, 3, 3, 3, 3, 1]   # 5 Linear+GELU layers
USE_SHORTCUT = True                # residual applied whenever in/out shapes match
BATCH = 2

# TPU-friendly padded layout: one full f32 vreg tile is (8 sublanes x 128 lanes)
PAD_ROWS = 8
PAD_COLS = 128

_GELU_C = math.sqrt(2.0 / math.pi)


def _gelu(z):
    # GELU tanh approximation, identical formula to the PyTorch GELU module in the spec.
    return 0.5 * z * (1.0 + jnp.tanh(_GELU_C * (z + 0.044715 * z * z * z)))


def example_dnn_kernel(x_ref, w_ref, b_ref, o_ref, *, dims, use_shortcut):
    h = x_ref[...].astype(jnp.float32)        # (8, 128) activations, real data in [:B, :3]
    w_all = w_ref[...].astype(jnp.float32)    # (5*8, 128) packed weights
    b_all = b_ref[...].astype(jnp.float32)    # (8, 128)  packed biases (row l = layer l)

    # Static 5-layer unrolled loop; everything stays in vregs.
    for l, (din, dout) in enumerate(dims):
        z = b_all[l:l + 1, :]                 # (1,128) bias row, broadcasts over sublanes
        for i in range(din):                  # 3-wide contraction as VPU broadcast-FMAs
            z = z + h[:, i:i + 1] * w_all[l * PAD_ROWS + i: l * PAD_ROWS + i + 1, :]
        y = _gelu(z)
        if use_shortcut and din == dout:      # trace-time branch (static shapes)
            h = h + y
        else:
            h = y

    o_ref[...] = h.astype(o_ref.dtype)        # lane-dense (8,128) unmasked store


def pack_params(weights, biases):
    """One-time packing of all layer weights/biases into two (sublane,lane)-aligned slabs."""
    n = len(weights)
    w_slab = jnp.zeros((n * PAD_ROWS, PAD_COLS), jnp.float32)
    b_slab = jnp.zeros((PAD_ROWS, PAD_COLS), jnp.float32)
    for l, (w, b) in enumerate(zip(weights, biases)):   # w: (din, dout), b: (dout,)
        w_slab = w_slab.at[l * PAD_ROWS: l * PAD_ROWS + w.shape[0], : w.shape[1]].set(w)
        b_slab = b_slab.at[l, : b.shape[0]].set(b)
    return w_slab, b_slab


@functools.partial(jax.jit, static_argnames=("use_shortcut",))
def example_dnn(x, w_slab, b_slab, *, use_shortcut=USE_SHORTCUT):
    batch, in_dim = x.shape
    dims = tuple(zip(LAYER_SIZES[:-1], LAYER_SIZES[1:]))

    # Pad only the per-call activation; parameters were packed once outside this path.
    x_p = jnp.zeros((PAD_ROWS, PAD_COLS), x.dtype).at[:batch, :in_dim].set(x)

    kern = functools.partial(example_dnn_kernel, dims=dims, use_shortcut=use_shortcut)
    vmem = pl.BlockSpec(memory_space=pltpu.MemorySpace.VMEM)

    out_p = pl.pallas_call(
        kern,
        out_shape=jax.ShapeDtypeStruct((PAD_ROWS, PAD_COLS), x.dtype),
        in_specs=[vmem, vmem, vmem],          # whole arrays, VMEM-resident, no grid/pipeline
        out_specs=vmem,
    )(x_p, w_slab, b_slab)

    # Slice back to the real (batch, last_layer_size) result (fused under jit).
    return out_p[:batch, : LAYER_SIZES[-1]]


def reference(x, weights, biases, *, use_shortcut=USE_SHORTCUT):
    # Pure-JAX reference mirroring ExampleDNN.forward exactly.
    h = x.astype(jnp.float32)
    for w, b in zip(weights, biases):
        y = _gelu(h @ w + b)
        if use_shortcut and h.shape == y.shape:
            h = h + y
        else:
            h = y
    return h


if __name__ == "__main__":
    key = jax.random.PRNGKey(0)
    keys = jax.random.split(key, 1 + 2 * (len(LAYER_SIZES) - 1))

    x = jax.random.normal(keys[0], (BATCH, LAYER_SIZES[0]), dtype=jnp.float32)

    weights, biases = [], []
    for li, (din, dout) in enumerate(zip(LAYER_SIZES[:-1], LAYER_SIZES[1:])):
        # weights stored pre-transposed as (in, out) so the forward computes y = x @ W + b
        weights.append(jax.random.normal(keys[1 + 2 * li], (din, dout), jnp.float32) * 0.5)
        biases.append(jax.random.normal(keys[2 + 2 * li], (dout,), jnp.float32) * 0.1)

    # One-time parameter packing (hoisted out of the per-call path).
    w_slab, b_slab = pack_params(weights, biases)
    w_slab = jax.block_until_ready(w_slab)
    b_slab = jax.block_until_ready(b_slab)

    out = jax.block_until_ready(example_dnn(x, w_slab, b_slab))
    ref = reference(x, weights, biases)

    assert out.shape == (BATCH, LAYER_SIZES[-1]), out.shape
    max_err = float(jnp.max(jnp.abs(out - ref)))
    assert jnp.allclose(out, ref, atol=1e-4, rtol=1e-4), max_err
    print("KERNEL_OK")
</pallas_src>

<mosaic_0001>
module attributes {stable_mosaic.version = 11 : i64} {
  func.func @example_dnn_kernel(%arg0: memref<8x128xf32, #tpu.memory_space<vmem>>, %arg1: memref<40x128xf32, #tpu.memory_space<vmem>>, %arg2: memref<8x128xf32, #tpu.memory_space<vmem>>, %arg3: memref<8x128xf32, #tpu.memory_space<vmem>>) attributes {dimension_semantics = [], scalar_prefetch = 0 : i64, scratch_operands = 0 : i64, tpu.core_type = #tpu.core_type<tc>} {
    %c0 = arith.constant 0 : index
    %c0_0 = arith.constant 0 : index
    %0 = vector.load %arg0[%c0, %c0_0] : memref<8x128xf32, #tpu.memory_space<vmem>>, vector<8x128xf32>
    %c0_1 = arith.constant 0 : index
    %c0_2 = arith.constant 0 : index
    %1 = vector.load %arg1[%c0_1, %c0_2] : memref<40x128xf32, #tpu.memory_space<vmem>>, vector<40x128xf32>
    %c0_3 = arith.constant 0 : index
    %c0_4 = arith.constant 0 : index
    %2 = vector.load %arg2[%c0_3, %c0_4] : memref<8x128xf32, #tpu.memory_space<vmem>>, vector<8x128xf32>
    %3 = vector.extract_strided_slice %2 {offsets = [0, 0], sizes = [1, 128], strides = [1, 1]} : vector<8x128xf32> to vector<1x128xf32>
    %4 = vector.extract_strided_slice %0 {offsets = [0, 0], sizes = [8, 1], strides = [1, 1]} : vector<8x128xf32> to vector<8x1xf32>
    %5 = vector.extract_strided_slice %1 {offsets = [0, 0], sizes = [1, 128], strides = [1, 1]} : vector<40x128xf32> to vector<1x128xf32>
    %6 = vector.broadcast %4 : vector<8x1xf32> to vector<8x128xf32>
    %7 = vector.broadcast %5 : vector<1x128xf32> to vector<8x128xf32>
    %8 = arith.mulf %6, %7 : vector<8x128xf32>
    %9 = vector.broadcast %3 : vector<1x128xf32> to vector<8x128xf32>
    %10 = arith.addf %9, %8 : vector<8x128xf32>
    %11 = vector.extract_strided_slice %0 {offsets = [0, 1], sizes = [8, 1], strides = [1, 1]} : vector<8x128xf32> to vector<8x1xf32>
    %12 = vector.extract_strided_slice %1 {offsets = [1, 0], sizes = [1, 128], strides = [1, 1]} : vector<40x128xf32> to vector<1x128xf32>
    %13 = vector.broadcast %11 : vector<8x1xf32> to vector<8x128xf32>
    %14 = vector.broadcast %12 : vector<1x128xf32> to vector<8x128xf32>
    %15 = arith.mulf %13, %14 : vector<8x128xf32>
    %16 = arith.addf %10, %15 : vector<8x128xf32>
    %17 = vector.extract_strided_slice %0 {offsets = [0, 2], sizes = [8, 1], strides = [1, 1]} : vector<8x128xf32> to vector<8x1xf32>
    %18 = vector.extract_strided_slice %1 {offsets = [2, 0], sizes = [1, 128], strides = [1, 1]} : vector<40x128xf32> to vector<1x128xf32>
    %19 = vector.broadcast %17 : vector<8x1xf32> to vector<8x128xf32>
    %20 = vector.broadcast %18 : vector<1x128xf32> to vector<8x128xf32>
    %21 = arith.mulf %19, %20 : vector<8x128xf32>
    %22 = arith.addf %16, %21 : vector<8x128xf32>
    %cst = arith.constant 5.000000e-01 : f32
    %23 = vector.broadcast %cst : f32 to vector<8x128xf32>
    %24 = arith.mulf %23, %22 : vector<8x128xf32>
    %cst_5 = arith.constant 4.471500e-02 : f32
    %25 = vector.broadcast %cst_5 : f32 to vector<8x128xf32>
    %26 = arith.mulf %25, %22 : vector<8x128xf32>
    %27 = arith.mulf %26, %22 : vector<8x128xf32>
    %28 = arith.mulf %27, %22 : vector<8x128xf32>
    %29 = arith.addf %22, %28 : vector<8x128xf32>
    %cst_6 = arith.constant 0.797884583 : f32
    %30 = vector.broadcast %cst_6 : f32 to vector<8x128xf32>
    %31 = arith.mulf %30, %29 : vector<8x128xf32>
    %32 = math.tanh %31 : vector<8x128xf32>
    %cst_7 = arith.constant 1.000000e+00 : f32
    %33 = vector.broadcast %cst_7 : f32 to vector<8x128xf32>
    %34 = arith.addf %33, %32 : vector<8x128xf32>
    %35 = arith.mulf %24, %34 : vector<8x128xf32>
    %36 = arith.addf %0, %35 : vector<8x128xf32>
    %37 = vector.extract_strided_slice %2 {offsets = [1, 0], sizes = [1, 128], strides = [1, 1]} : vector<8x128xf32> to vector<1x128xf32>
    %38 = vector.extract_strided_slice %36 {offsets = [0, 0], sizes = [8, 1], strides = [1, 1]} : vector<8x128xf32> to vector<8x1xf32>
    %39 = vector.extract_strided_slice %1 {offsets = [8, 0], sizes = [1, 128], strides = [1, 1]} : vector<40x128xf32> to vector<1x128xf32>
    %40 = vector.broadcast %38 : vector<8x1xf32> to vector<8x128xf32>
    %41 = vector.broadcast %39 : vector<1x128xf32> to vector<8x128xf32>
    %42 = arith.mulf %40, %41 : vector<8x128xf32>
    %43 = vector.broadcast %37 : vector<1x128xf32> to vector<8x128xf32>
    %44 = arith.addf %43, %42 : vector<8x128xf32>
    %45 = vector.extract_strided_slice %36 {offsets = [0, 1], sizes = [8, 1], strides = [1, 1]} : vector<8x128xf32> to vector<8x1xf32>
    %46 = vector.extract_strided_slice %1 {offsets = [9, 0], sizes = [1, 128], strides = [1, 1]} : vector<40x128xf32> to vector<1x128xf32>
    %47 = vector.broadcast %45 : vector<8x1xf32> to vector<8x128xf32>
    %48 = vector.broadcast %46 : vector<1x128xf32> to vector<8x128xf32>
    %49 = arith.mulf %47, %48 : vector<8x128xf32>
    %50 = arith.addf %44, %49 : vector<8x128xf32>
    %51 = vector.extract_strided_slice %36 {offsets = [0, 2], sizes = [8, 1], strides = [1, 1]} : vector<8x128xf32> to vector<8x1xf32>
    %52 = vector.extract_strided_slice %1 {offsets = [10, 0], sizes = [1, 128], strides = [1, 1]} : vector<40x128xf32> to vector<1x128xf32>
    %53 = vector.broadcast %51 : vector<8x1xf32> to vector<8x128xf32>
    %54 = vector.broadcast %52 : vector<1x128xf32> to vector<8x128xf32>
    %55 = arith.mulf %53, %54 : vector<8x128xf32>
    %56 = arith.addf %50, %55 : vector<8x128xf32>
    %cst_8 = arith.constant 5.000000e-01 : f32
    %57 = vector.broadcast %cst_8 : f32 to vector<8x128xf32>
    %58 = arith.mulf %57, %56 : vector<8x128xf32>
    %cst_9 = arith.constant 4.471500e-02 : f32
    %59 = vector.broadcast %cst_9 : f32 to vector<8x128xf32>
    %60 = arith.mulf %59, %56 : vector<8x128xf32>
    %61 = arith.mulf %60, %56 : vector<8x128xf32>
    %62 = arith.mulf %61, %56 : vector<8x128xf32>
    %63 = arith.addf %56, %62 : vector<8x128xf32>
    %cst_10 = arith.constant 0.797884583 : f32
    %64 = vector.broadcast %cst_10 : f32 to vector<8x128xf32>
    %65 = arith.mulf %64, %63 : vector<8x128xf32>
    %66 = math.tanh %65 : vector<8x128xf32>
    %cst_11 = arith.constant 1.000000e+00 : f32
    %67 = vector.broadcast %cst_11 : f32 to vector<8x128xf32>
    %68 = arith.addf %67, %66 : vector<8x128xf32>
    %69 = arith.mulf %58, %68 : vector<8x128xf32>
    %70 = arith.addf %36, %69 : vector<8x128xf32>
    %71 = vector.extract_strided_slice %2 {offsets = [2, 0], sizes = [1, 128], strides = [1, 1]} : vector<8x128xf32> to vector<1x128xf32>
    %72 = vector.extract_strided_slice %70 {offsets = [0, 0], sizes = [8, 1], strides = [1, 1]} : vector<8x128xf32> to vector<8x1xf32>
    %73 = vector.extract_strided_slice %1 {offsets = [16, 0], sizes = [1, 128], strides = [1, 1]} : vector<40x128xf32> to vector<1x128xf32>
    %74 = vector.broadcast %72 : vector<8x1xf32> to vector<8x128xf32>
    %75 = vector.broadcast %73 : vector<1x128xf32> to vector<8x128xf32>
    %76 = arith.mulf %74, %75 : vector<8x128xf32>
    %77 = vector.broadcast %71 : vector<1x128xf32> to vector<8x128xf32>
    %78 = arith.addf %77, %76 : vector<8x128xf32>
    %79 = vector.extract_strided_slice %70 {offsets = [0, 1], sizes = [8, 1], strides = [1, 1]} : vector<8x128xf32> to vector<8x1xf32>
    %80 = vector.extract_strided_slice %1 {offsets = [17, 0], sizes = [1, 128], strides = [1, 1]} : vector<40x128xf32> to vector<1x128xf32>
    %81 = vector.broadcast %79 : vector<8x1xf32> to vector<8x128xf32>
    %82 = vector.broadcast %80 : vector<1x128xf32> to vector<8x128xf32>
    %83 = arith.mulf %81, %82 : vector<8x128xf32>
    %84 = arith.addf %78, %83 : vector<8x128xf32>
    %85 = vector.extract_strided_slice %70 {offsets = [0, 2], sizes = [8, 1], strides = [1, 1]} : vector<8x128xf32> to vector<8x1xf32>
    %86 = vector.extract_strided_slice %1 {offsets = [18, 0], sizes = [1, 128], strides = [1, 1]} : vector<40x128xf32> to vector<1x128xf32>
    %87 = vector.broadcast %85 : vector<8x1xf32> to vector<8x128xf32>
    %88 = vector.broadcast %86 : vector<1x128xf32> to vector<8x128xf32>
    %89 = arith.mulf %87, %88 : vector<8x128xf32>
    %90 = arith.addf %84, %89 : vector<8x128xf32>
    %cst_12 = arith.constant 5.000000e-01 : f32
    %91 = vector.broadcast %cst_12 : f32 to vector<8x128xf32>
    %92 = arith.mulf %91, %90 : vector<8x128xf32>
    %cst_13 = arith.constant 4.471500e-02 : f32
    %93 = vector.broadcast %cst_13 : f32 to vector<8x128xf32>
    %94 = arith.mulf %93, %90 : vector<8x128xf32>
    %95 = arith.mulf %94, %90 : vector<8x128xf32>
    %96 = arith.mulf %95, %90 : vector<8x128xf32>
    %97 = arith.addf %90, %96 : vector<8x128xf32>
    %cst_14 = arith.constant 0.797884583 : f32
    %98 = vector.broadcast %cst_14 : f32 to vector<8x128xf32>
    %99 = arith.mulf %98, %97 : vector<8x128xf32>
    %100 = math.tanh %99 : vector<8x128xf32>
    %cst_15 = arith.constant 1.000000e+00 : f32
    %101 = vector.broadcast %cst_15 : f32 to vector<8x128xf32>
    %102 = arith.addf %101, %100 : vector<8x128xf32>
    %103 = arith.mulf %92, %102 : vector<8x128xf32>
    %104 = arith.addf %70, %103 : vector<8x128xf32>
    %105 = vector.extract_strided_slice %2 {offsets = [3, 0], sizes = [1, 128], strides = [1, 1]} : vector<8x128xf32> to vector<1x128xf32>
    %106 = vector.extract_strided_slice %104 {offsets = [0, 0], sizes = [8, 1], strides = [1, 1]} : vector<8x128xf32> to vector<8x1xf32>
    %107 = vector.extract_strided_slice %1 {offsets = [24, 0], sizes = [1, 128], strides = [1, 1]} : vector<40x128xf32> to vector<1x128xf32>
    %108 = vector.broadcast %106 : vector<8x1xf32> to vector<8x128xf32>
    %109 = vector.broadcast %107 : vector<1x128xf32> to vector<8x128xf32>
    %110 = arith.mulf %108, %109 : vector<8x128xf32>
    %111 = vector.broadcast %105 : vector<1x128xf32> to vector<8x128xf32>
    %112 = arith.addf %111, %110 : vector<8x128xf32>
    %113 = vector.extract_strided_slice %104 {offsets = [0, 1], sizes = [8, 1], strides = [1, 1]} : vector<8x128xf32> to vector<8x1xf32>
    %114 = vector.extract_strided_slice %1 {offsets = [25, 0], sizes = [1, 128], strides = [1, 1]} : vector<40x128xf32> to vector<1x128xf32>
    %115 = vector.broadcast %113 : vector<8x1xf32> to vector<8x128xf32>
    %116 = vector.broadcast %114 : vector<1x128xf32> to vector<8x128xf32>
    %117 = arith.mulf %115, %116 : vector<8x128xf32>
    %118 = arith.addf %112, %117 : vector<8x128xf32>
    %119 = vector.extract_strided_slice %104 {offsets = [0, 2], sizes = [8, 1], strides = [1, 1]} : vector<8x128xf32> to vector<8x1xf32>
    %120 = vector.extract_strided_slice %1 {offsets = [26, 0], sizes = [1, 128], strides = [1, 1]} : vector<40x128xf32> to vector<1x128xf32>
    %121 = vector.broadcast %119 : vector<8x1xf32> to vector<8x128xf32>
    %122 = vector.broadcast %120 : vector<1x128xf32> to vector<8x128xf32>
    %123 = arith.mulf %121, %122 : vector<8x128xf32>
    %124 = arith.addf %118, %123 : vector<8x128xf32>
    %cst_16 = arith.constant 5.000000e-01 : f32
    %125 = vector.broadcast %cst_16 : f32 to vector<8x128xf32>
    %126 = arith.mulf %125, %124 : vector<8x128xf32>
    %cst_17 = arith.constant 4.471500e-02 : f32
    %127 = vector.broadcast %cst_17 : f32 to vector<8x128xf32>
    %128 = arith.mulf %127, %124 : vector<8x128xf32>
    %129 = arith.mulf %128, %124 : vector<8x128xf32>
    %130 = arith.mulf %129, %124 : vector<8x128xf32>
    %131 = arith.addf %124, %130 : vector<8x128xf32>
    %cst_18 = arith.constant 0.797884583 : f32
    %132 = vector.broadcast %cst_18 : f32 to vector<8x128xf32>
    %133 = arith.mulf %132, %131 : vector<8x128xf32>
    %134 = math.tanh %133 : vector<8x128xf32>
    %cst_19 = arith.constant 1.000000e+00 : f32
    %135 = vector.broadcast %cst_19 : f32 to vector<8x128xf32>
    %136 = arith.addf %135, %134 : vector<8x128xf32>
    %137 = arith.mulf %126, %136 : vector<8x128xf32>
    %138 = arith.addf %104, %137 : vector<8x128xf32>
    %139 = vector.extract_strided_slice %2 {offsets = [4, 0], sizes = [1, 128], strides = [1, 1]} : vector<8x128xf32> to vector<1x128xf32>
    %140 = vector.extract_strided_slice %138 {offsets = [0, 0], sizes = [8, 1], strides = [1, 1]} : vector<8x128xf32> to vector<8x1xf32>
    %141 = vector.extract_strided_slice %1 {offsets = [32, 0], sizes = [1, 128], strides = [1, 1]} : vector<40x128xf32> to vector<1x128xf32>
    %142 = vector.broadcast %140 : vector<8x1xf32> to vector<8x128xf32>
    %143 = vector.broadcast %141 : vector<1x128xf32> to vector<8x128xf32>
    %144 = arith.mulf %142, %143 : vector<8x128xf32>
    %145 = vector.broadcast %139 : vector<1x128xf32> to vector<8x128xf32>
    %146 = arith.addf %145, %144 : vector<8x128xf32>
    %147 = vector.extract_strided_slice %138 {offsets = [0, 1], sizes = [8, 1], strides = [1, 1]} : vector<8x128xf32> to vector<8x1xf32>
    %148 = vector.extract_strided_slice %1 {offsets = [33, 0], sizes = [1, 128], strides = [1, 1]} : vector<40x128xf32> to vector<1x128xf32>
    %149 = vector.broadcast %147 : vector<8x1xf32> to vector<8x128xf32>
    %150 = vector.broadcast %148 : vector<1x128xf32> to vector<8x128xf32>
    %151 = arith.mulf %149, %150 : vector<8x128xf32>
    %152 = arith.addf %146, %151 : vector<8x128xf32>
    %153 = vector.extract_strided_slice %138 {offsets = [0, 2], sizes = [8, 1], strides = [1, 1]} : vector<8x128xf32> to vector<8x1xf32>
    %154 = vector.extract_strided_slice %1 {offsets = [34, 0], sizes = [1, 128], strides = [1, 1]} : vector<40x128xf32> to vector<1x128xf32>
    %155 = vector.broadcast %153 : vector<8x1xf32> to vector<8x128xf32>
    %156 = vector.broadcast %154 : vector<1x128xf32> to vector<8x128xf32>
    %157 = arith.mulf %155, %156 : vector<8x128xf32>
    %158 = arith.addf %152, %157 : vector<8x128xf32>
    %cst_20 = arith.constant 5.000000e-01 : f32
    %159 = vector.broadcast %cst_20 : f32 to vector<8x128xf32>
    %160 = arith.mulf %159, %158 : vector<8x128xf32>
    %cst_21 = arith.constant 4.471500e-02 : f32
    %161 = vector.broadcast %cst_21 : f32 to vector<8x128xf32>
    %162 = arith.mulf %161, %158 : vector<8x128xf32>
    %163 = arith.mulf %162, %158 : vector<8x128xf32>
    %164 = arith.mulf %163, %158 : vector<8x128xf32>
    %165 = arith.addf %158, %164 : vector<8x128xf32>
    %cst_22 = arith.constant 0.797884583 : f32
    %166 = vector.broadcast %cst_22 : f32 to vector<8x128xf32>
    %167 = arith.mulf %166, %165 : vector<8x128xf32>
    %168 = math.tanh %167 : vector<8x128xf32>
    %cst_23 = arith.constant 1.000000e+00 : f32
    %169 = vector.broadcast %cst_23 : f32 to vector<8x128xf32>
    %170 = arith.addf %169, %168 : vector<8x128xf32>
    %171 = arith.mulf %160, %170 : vector<8x128xf32>
    %c0_24 = arith.constant 0 : index
    %c0_25 = arith.constant 0 : index
    %172 = vector.load %arg3[%c0_24, %c0_25] : memref<8x128xf32, #tpu.memory_space<vmem>>, vector<8x128xf32>
    tpu.vector_store %arg3[%c0_24, %c0_25], %171 {strides = array<i32>} : memref<8x128xf32, #tpu.memory_space<vmem>>, vector<8x128xf32>,
    return
  }
}

</mosaic_0001>

<bundles_post_ra>
// kernel: example_dnn.1
= control target key start
LH: loop header
LB: loop body
LE: loop exit
PB: predicated region body
PF: predicated region fallthrough
CT: control target
= control target key end

     0   :  { %8 = vsyncpa [#allocation3], 0  ;;  %s261_s15 = smov [#allocation2]   ;;  %s262_s17 = smov 128   ;;  %s318_s0 = inlined_call_operand.vmem [shape: f32[8,128], index: 0, kind: input, shape index: {}]   ;;  %s319_s1 = inlined_call_operand.hbm [shape: f32[40,128], index: 1, kind: input, shape index: {}]   ;;  %s320_s2 = inlined_call_operand.vmem [shape: f32[8,128], index: 2, kind: input, shape index: {}]   ;;  %s321_s3 = inlined_call_operand.vmem [shape: f32[8,128], index: 3, kind: output, shape index: {}]  }
   0x1   :  { %s15_s14 = sshll.u32 %s319_s1, 4  ;;  %s17_s16 = sshll.u32 %s261_s15, 4  ;;  %s16_s14 = int_to_ptr.hbm [resolvable:$true] %s15_s14  ;;  %s18_s16 = int_to_ptr.vmem [resolvable:$true] %s17_s16 }
   0x2   :  { %s263_s18 = smov 8  }
   0x3   :  { %23 = dma.hbm_to_vmem [thread:$0]  %s16_s14, 640, %s18_s16, [#allocation3], %s262_s17, %s262_s17, %s263_s18  }
   0x4   :  { %259 = dma.done.wait [#allocation3], 640  }
   0x5   :  { %260 = vsyncadd [#allocation3], 4294966656  ;;  %v264_v0 = vmov 0   ;;  %v265_v1 = vmov 2   ;;  %v266_v2 = vmov 1   ;;  %v30_v3 = vld [vmem:[%s318_s0] sm:$0xff] }
   0x6   :  { %213 = vset.pattern.permute.xlu0 %v264_v0  ;;  %215 = vset.pattern.permute.xlu1 %v265_v1  ;;  %v31_v4 = vld [vmem:[#allocation2] sm:$0xff]  ;;  %v32_v30 = vld [vmem:[#allocation2 + $0x8] sm:$0xff]  ;;  %v33_v53 = vld [vmem:[#allocation2 + $0x10] sm:$0xff] }
   0x7   :  { %217 = vset.pattern.permute.xlu2 %v266_v2  ;;  %39 = vperm.xlu0 %213, %v30_v3   ;;  %v42_v6 = vperm.slane %v31_v4, 0  ;;  %v302_v7 = vld [vmem:[%s320_s2] sm:$0xff]  ;;  %v50_v10 = vperm.slane %v31_v4, 1  ;;  %v57_v11 = vperm.slane %v31_v4, 2  ;;  %v75_v31 = vperm.slane %v32_v30, 0 }
   0x8   :  { %54 = vperm.xlu1 %215, %v30_v3   ;;  %v44_v8 = vperm.slane %v302_v7, 0  ;;  %v83_v32 = vperm.slane %v32_v30, 1  ;;  %v77_v33 = vperm.slane %v302_v7, 1  ;;  %v90_v35 = vperm.slane %v32_v30, 2 }
   0x9   :  { %v108_v54 = vperm.slane %v33_v53, 0  ;;  %v116_v55 = vperm.slane %v33_v53, 1  ;;  %v110_v56 = vperm.slane %v302_v7, 2  ;;  %v123_v59 = vperm.slane %v33_v53, 2 }
   0xf   :  { %214 = vset.pattern.permute.xlu0 %v266_v2 }
  0x10   :  { %216 = vset.pattern.permute.xlu1 %v264_v0  ;;  %47 = vperm.xlu0 %214, %v30_v3  }
  0x18   :  { %220 = vset.pattern.permute.xlu0 %v265_v1 }
  0x79   :  { %v40_v5 = vpop.permute.xlu0 %39 }
  0x7a   :  { %v43_v9 = vmul.f32 %v42_v6, %v40_v5  ;;  %v55_v12 = vpop.permute.xlu1 %54 }
  0x7b   :  { %v58_v16 = vmul.f32 %v57_v11, %v55_v12 }
  0x7c   :  { %v45_v14 = vadd.f32 %v44_v8, %v43_v9 }
  0x82   :  { %v48_v13 = vpop.permute.xlu0 %47 }
  0x83   :  { %v51_v15 = vmul.f32 %v50_v10, %v48_v13 }
  0x85   :  { %v52_v17 = vadd.f32 %v51_v15, %v45_v14 }
  0x87   :  { %v59_v18 = vadd.f32 %v58_v16, %v52_v17  ;;  %v34_v16 = vld [vmem:[#allocation2 + $0x18] sm:$0xff] }
  0x88   :  { %v141_v17 = vperm.slane %v34_v16, 0 }
  0x89   :  { %v61_v19 = vmul.f32 0.044715, %v59_v18  ;;  %v60_v25 = vmul.f32 0.5, %v59_v18 }
  0x8b   :  { %v62_v20 = vmul.f32 %v61_v19, %v59_v18  ;;  %v143_v19 = vperm.slane %v302_v7, 3 }
  0x8d   :  { %v63_v21 = vmul.f32 %v62_v20, %v59_v18 }
  0x8f   :  { %v64_v22 = vadd.f32 %v63_v21, %v59_v18  ;;  %v149_v21 = vperm.slane %v34_v16, 1 }
  0x91   :  { %v65_v23 = vmul.f32 0.7978846, %v64_v22 }
  0x93   :  { %225 = vtanh.f32 %v65_v23 }
  0x99   :  { %v226_v24 = vpop.eup %225 }
  0x9a   :  { %v67_v26 = vadd.f32 1.0, %v226_v24  ;;  %v156_v24 = vperm.slane %v34_v16, 2 }
  0x9c   :  { %v68_v27 = vmul.f32 %v67_v26, %v60_v25 }
  0x9e   :  { %v69_v28 = vadd.f32 %v68_v27, %v30_v3 }
  0xa0   :  { %80 = vperm.xlu2 %217, %v69_v28   ;;  %72 = vperm.xlu1 %216, %v69_v28  }
  0xa8   :  { %218 = vset.pattern.permute.xlu2 %v265_v1 }
  0xa9   :  { %87 = vperm.xlu2 %218, %v69_v28  }
  0xb1   :  { %219 = vset.pattern.permute.xlu2 %v266_v2 }
  0xfa   :  { %v81_v29 = vpop.permute.xlu2 %80 }
  0xfb   :  { %v84_v38 = vmul.f32 %v83_v32, %v81_v29 }
 0x103   :  { %v88_v37 = vpop.permute.xlu2 %87 }
 0x104   :  { %v91_v40 = vmul.f32 %v90_v35, %v88_v37 }
 0x112   :  { %v73_v34 = vpop.permute.xlu1 %72 }
 0x113   :  { %v76_v36 = vmul.f32 %v75_v31, %v73_v34 }
 0x115   :  { %v78_v39 = vadd.f32 %v77_v33, %v76_v36 }
 0x117   :  { %v85_v41 = vadd.f32 %v84_v38, %v78_v39  ;;  %v35_v39 = vld [vmem:[#allocation2 + $0x20] sm:$0xff] }
 0x119   :  { %v92_v42 = vadd.f32 %v91_v40, %v85_v41  ;;  %v174_v40 = vperm.slane %v35_v39, 0 }
 0x11b   :  { %v94_v43 = vmul.f32 0.044715, %v92_v42  ;;  %v93_v49 = vmul.f32 0.5, %v92_v42 }
 0x11d   :  { %v95_v44 = vmul.f32 %v94_v43, %v92_v42 }
 0x11f   :  { %v96_v45 = vmul.f32 %v95_v44, %v92_v42  ;;  %v182_v44 = vperm.slane %v35_v39, 1 }
 0x121   :  { %v97_v46 = vadd.f32 %v96_v45, %v92_v42  ;;  %v176_v42 = vperm.slane %v302_v7, 4  ;;  %v189_v45 = vperm.slane %v35_v39, 2 }
 0x123   :  { %v98_v47 = vmul.f32 0.7978846, %v97_v46 }
 0x125   :  { %227 = vtanh.f32 %v98_v47 }
 0x12b   :  { %v228_v48 = vpop.eup %227 }
 0x12c   :  { %v100_v50 = vadd.f32 1.0, %v228_v48 }
 0x12e   :  { %v101_v51 = vmul.f32 %v100_v50, %v93_v49 }
 0x130   :  { %v102_v52 = vadd.f32 %v101_v51, %v69_v28 }
 0x132   :  { %120 = vperm.xlu0 %220, %v102_v52   ;;  %113 = vperm.xlu2 %219, %v102_v52  }
 0x133   :  { %105 = vperm.xlu1 %216, %v102_v52  }
 0x13a   :  { %223 = vset.pattern.permute.xlu0 %v266_v2 }
 0x18c   :  { %v114_v57 = vpop.permute.xlu2 %113 }
 0x18d   :  { %v117_v62 = vmul.f32 %v116_v55, %v114_v57 }
 0x1a4   :  { %v121_v61 = vpop.permute.xlu0 %120 }
 0x1a5   :  { %v106_v58 = vpop.permute.xlu1 %105  ;;  %v124_v3 = vmul.f32 %v123_v59, %v121_v61 }
 0x1a6   :  { %v109_v60 = vmul.f32 %v108_v54, %v106_v58 }
 0x1a8   :  { %v111_v63 = vadd.f32 %v110_v56, %v109_v60 }
 0x1aa   :  { %v118_v4 = vadd.f32 %v117_v62, %v111_v63 }
 0x1ac   :  { %v125_v5 = vadd.f32 %v124_v3, %v118_v4 }
 0x1ae   :  { %v127_v6 = vmul.f32 0.044715, %v125_v5  ;;  %v126_v12 = vmul.f32 0.5, %v125_v5 }
 0x1b0   :  { %v128_v8 = vmul.f32 %v127_v6, %v125_v5 }
 0x1b2   :  { %v129_v9 = vmul.f32 %v128_v8, %v125_v5 }
 0x1b4   :  { %v130_v10 = vadd.f32 %v129_v9, %v125_v5 }
 0x1b6   :  { %v131_v2 = vmul.f32 0.7978846, %v130_v10 }
 0x1b8   :  { %229 = vtanh.f32 %v131_v2 }
 0x1be   :  { %v230_v11 = vpop.eup %229 }
 0x1bf   :  { %v133_v13 = vadd.f32 1.0, %v230_v11 }
 0x1c1   :  { %v134_v14 = vmul.f32 %v133_v13, %v126_v12 }
 0x1c3   :  { %v135_v15 = vadd.f32 %v134_v14, %v102_v52 }
 0x1c5   :  { %146 = vperm.xlu2 %219, %v135_v15   ;;  %138 = vperm.xlu1 %216, %v135_v15  }
 0x1cd   :  { %221 = vset.pattern.permute.xlu1 %v265_v1  ;;  %222 = vset.pattern.permute.xlu2 %v264_v0 }
 0x1ce   :  { %153 = vperm.xlu1 %221, %v135_v15  }
 0x21f   :  { %v147_v22 = vpop.permute.xlu2 %146 }
 0x220   :  { %v150_v25 = vmul.f32 %v149_v21, %v147_v22 }
 0x237   :  { %v139_v18 = vpop.permute.xlu1 %138 }
 0x238   :  { %v142_v20 = vmul.f32 %v141_v17, %v139_v18 }
 0x23a   :  { %v144_v23 = vadd.f32 %v143_v19, %v142_v20 }
 0x23c   :  { %v151_v27 = vadd.f32 %v150_v25, %v144_v23 }
 0x240   :  { %v154_v26 = vpop.permute.xlu1 %153 }
 0x241   :  { %v157_v28 = vmul.f32 %v156_v24, %v154_v26 }
 0x243   :  { %v158_v29 = vadd.f32 %v157_v28, %v151_v27 }
 0x245   :  { %v160_v30 = vmul.f32 0.044715, %v158_v29  ;;  %v159_v35 = vmul.f32 0.5, %v158_v29 }
 0x247   :  { %v161_v31 = vmul.f32 %v160_v30, %v158_v29 }
 0x249   :  { %v162_v32 = vmul.f32 %v161_v31, %v158_v29 }
 0x24b   :  { %v163_v0 = vadd.f32 %v162_v32, %v158_v29 }
 0x24d   :  { %v164_v33 = vmul.f32 0.7978846, %v163_v0 }
 0x24f   :  { %231 = vtanh.f32 %v164_v33 }
 0x255   :  { %v232_v34 = vpop.eup %231 }
 0x256   :  { %v166_v36 = vadd.f32 1.0, %v232_v34 }
 0x258   :  { %v167_v37 = vmul.f32 %v166_v36, %v159_v35 }
 0x25a   :  { %v168_v38 = vadd.f32 %v167_v37, %v135_v15 }
 0x25c   :  { %186 = vperm.xlu1 %221, %v168_v38   ;;  %179 = vperm.xlu0 %223, %v168_v38  }
 0x25d   :  { %171 = vperm.xlu2 %222, %v168_v38  }
 0x264   :  { %224 = vset.pattern.permute.xlu0 %v265_v1 }
 0x2b7   :  { %v172_v41 = vpop.permute.xlu2 %171 }
 0x2b8   :  { %v175_v43 = vmul.f32 %v174_v40, %v172_v41 }
 0x2ba   :  { %v177_v48 = vadd.f32 %v176_v42, %v175_v43 }
 0x2ce   :  { %v187_v46 = vpop.permute.xlu1 %186  ;;  %v180_v47 = vpop.permute.xlu0 %179 }
 0x2cf   :  { %v183_v49 = vmul.f32 %v182_v44, %v180_v47  ;;  %v190_v50 = vmul.f32 %v189_v45, %v187_v46 }
 0x2d1   :  { %v184_v51 = vadd.f32 %v183_v49, %v177_v48 }
 0x2d3   :  { %v191_v52 = vadd.f32 %v190_v50, %v184_v51 }
 0x2d5   :  { %v193_v53 = vmul.f32 0.044715, %v191_v52  ;;  %v192_v58 = vmul.f32 0.5, %v191_v52 }
 0x2d7   :  { %v194_v54 = vmul.f32 %v193_v53, %v191_v52 }
 0x2d9   :  { %v195_v55 = vmul.f32 %v194_v54, %v191_v52 }
 0x2db   :  { %v196_v56 = vadd.f32 %v195_v55, %v191_v52 }
 0x2dd   :  { %v197_v1 = vmul.f32 0.7978846, %v196_v56 }
 0x2df   :  { %233 = vtanh.f32 %v197_v1 }
 0x2e5   :  { %v234_v57 = vpop.eup %233 }
 0x2e6   :  { %v199_v59 = vadd.f32 1.0, %v234_v57 }
 0x2e8   :  { %v200_v7 = vmul.f32 %v199_v59, %v192_v58 }
 0x2ea   :  { %201 = vst [vmem:[%s321_s3] sm:$0xff] %v200_v7 }
 0x2eb   :  { %206 = vsyncpa [#allocation3], 1 }

</bundles_post_ra>
